<compile_context>
chip_gen: v6e
topology: v6e:2x2x1
jax: 0.10.0
libtpu: 0.0.40
codegen_flags: <defaults>
</compile_context>

<pallas_src>
import functools

import jax
import jax.numpy as jnp
from jax import lax
from jax.experimental import pallas as pl
from jax.experimental.pallas import tpu as pltpu

INF = 10000.0


def _egp_kernel(TQ, tril_mask, epi_dtype,
                rq_ref, rk_ref, amr_ref, amc_ref, be_ref, bo_ref, out_ref):
    """One (TQ query rows) x (all L key columns) x (all heads) slab of the logits."""
    dn = (((1,), (1,)), ((), ()))                 # contract last axes: (M,K)x(N,K)->(M,N)

    # Single K=D MXU matmul; the 1/sqrt(D) score scale is folded into rq on the host.
    qk = lax.dot_general(rq_ref[0], rk_ref[0], dn,
                         preferred_element_type=jnp.float32)            # (TQ, L) f32

    # Fused (TQ, L) mask epilogue:
    #   amc = INF*mask[m] (this tile's rows), amr = mask[n] (all L columns), so
    #   amc*amr - INF == -(1 - mask[m]*mask[n]) * INF  (exactly 0.0 on unmasked cells).
    pen = amc_ref[0] * amr_ref[0] - INF
    if tril_mask:
        row0 = pl.program_id(1) * TQ
        rows = row0 + lax.broadcasted_iota(jnp.int32, qk.shape, 0)
        cols = lax.broadcasted_iota(jnp.int32, qk.shape, 1)
        pen = pen - jnp.where(rows > cols, jnp.float32(INF), jnp.float32(0.0))
    qk = (qk + pen).astype(epi_dtype)

    # Exactly two broadcast adds per output element, then a lane-dense store.
    # (bo's (heads, TQ) -> (heads, TQ, 1) broadcast implies a small lane->sublane relayout;
    #  it is heads*TQ elements per tile and off the per-output-element path.)
    be = be_ref[0].astype(epi_dtype)              # (heads, L)  key-position  ("end")   bias
    bo = bo_ref[0].astype(epi_dtype)              # (heads, TQ) query-position ("start") bias
    out_ref[0] = (qk[None, :, :] + be[:, None, :] + bo[:, :, None]).astype(out_ref.dtype)


def _vmem_bytes(heads, L, D, TQ, out_isz, c_isz):
    out_b = 2 * heads * TQ * L * out_isz              # double-buffered output slab (dominant)
    in_b = 2 * (TQ * D * c_isz + L * D * c_isz        # rq tile, rk (whole batch row)
                + L * 4 + TQ * 4                      # row / column masks
                + heads * L * 4 + heads * TQ * 4)     # be, bo
    tmp_b = 2 * TQ * L * 4                            # in-kernel f32 temporaries (qk, penalty)
    return out_b + in_b + tmp_b


def _pick_tq(L, target, heads, D, out_isz, c_isz, budget):
    """Largest TQ (multiple of 128 dividing L, or full L) whose VMEM estimate fits budget."""
    cands = [t for t in range((min(target, L) // 128) * 128, 0, -128) if L % t == 0]
    if not cands:
        cands = [L]                                   # full-extent block is always legal
    for t in cands:
        if _vmem_bytes(heads, L, D, t, out_isz, c_isz) <= budget:
            return t
    return cands[-1]


def efficient_global_pointer(x, attention_mask, params, *, heads, head_size,
                             tril_mask=True, tq=256,
                             out_dtype=jnp.bfloat16, compute_dtype=jnp.bfloat16,
                             bf16_epilogue=None):
    """Forward pass of EfficientGlobalPointer; output (B, heads, L, L) like the torch module.

    Production defaults are bf16 output / bf16 MXU operands; pass float32 for bit-accurate
    comparison against the reference.  On v5e (no bf16 VPU) pass bf16_epilogue=False.
    """
    B, L, H = x.shape
    D = head_size

    W1, b1 = params["W1"], params["b1"]               # (H, 2D), (2D,)
    W2, b2 = params["W2"], params["b2"]               # (2D, 2*heads), (2*heads,)
    sin = params["sin"][:L].astype(jnp.float32)
    cos = params["cos"][:L].astype(jnp.float32)

    # ---- hoisted per-batch phase (plain XLA; O(B*L*H*D) << the kernel's O(B*heads*L^2)) ----
    xf = x.astype(jnp.float32)
    h = xf @ W1.astype(jnp.float32) + b1.astype(jnp.float32)      # (B, L, 2D)
    qw, kw = h[..., 0::2], h[..., 1::2]
    q1, q2 = qw[..., 0::2], qw[..., 1::2]
    k1, k2 = kw[..., 0::2], kw[..., 1::2]
    scale = 1.0 / (D ** 0.5)
    # RoPE in "concatenated halves" order: any fixed permutation of the D axis is valid as
    # long as q and k share it (qk depends only on the dot product over D).  Score scale is
    # folded into the query side; operands are cast ONCE to compute_dtype (bf16 -> native MXU).
    rq = (jnp.concatenate([q1 * cos - q2 * sin, q1 * sin + q2 * cos], axis=-1)
          * scale).astype(compute_dtype)                          # (B, L, D)
    rk = jnp.concatenate([k1 * cos - k2 * sin, k1 * sin + k2 * cos],
                         axis=-1).astype(compute_dtype)           # (B, L, D)
    bias = 0.5 * (h @ W2.astype(jnp.float32) + b2.astype(jnp.float32))   # (B, L, 2*heads)
    be = jnp.transpose(bias[..., 0::2], (0, 2, 1))                # (B, heads, L) "end" bias
    bo = jnp.transpose(bias[..., 1::2], (0, 2, 1))                # (B, heads, L) "start" bias

    if attention_mask is None:
        am = jnp.ones((B, L), jnp.float32)                        # exact no-op penalty path
    else:
        am = attention_mask.astype(jnp.float32)
    am_row = am[:, None, :]                                       # (B, 1, L) lane-dense rows
    am_col_inf = (am * INF)[:, :, None]                           # (B, L, 1) INF-scaled cols

    # ---- per-generation tile size / VMEM budget -------------------------------------------
    try:
        vmem_cap = int(getattr(pltpu.get_tpu_info(), "vmem_capacity_bytes", 64 * 2 ** 20))
    except Exception:
        vmem_cap = 64 * 2 ** 20                                   # conservative v7x fallback
    budget = int(vmem_cap * 0.8)          # leave headroom for compiler-internal scratch/DMA

    out_isz = jnp.dtype(out_dtype).itemsize
    c_isz = jnp.dtype(compute_dtype).itemsize
    TQ = _pick_tq(L, tq, heads, D, out_isz, c_isz, budget)
    NQ = L // TQ
    vmem_limit = int(min(budget,
                         max(32 * 2 ** 20,
                             int(1.3 * _vmem_bytes(heads, L, D, TQ, out_isz, c_isz))
                             + (4 << 20))))

    if bf16_epilogue is None:
        bf16_epilogue = (jnp.dtype(out_dtype) == jnp.dtype(jnp.bfloat16))
    epi_dtype = out_dtype if bf16_epilogue else jnp.float32

    kernel = functools.partial(_egp_kernel, TQ, bool(tril_mask), epi_dtype)

    out = pl.pallas_call(
        kernel,
        out_shape=jax.ShapeDtypeStruct((B, heads, L, L), out_dtype),
        grid=(B, NQ),
        in_specs=[
            pl.BlockSpec((1, TQ, D), lambda b, q: (b, q, 0)),        # rq (this tile's rows)
            pl.BlockSpec((1, L, D), lambda b, q: (b, 0, 0)),         # rk (all key positions)
            pl.BlockSpec((1, 1, L), lambda b, q: (b, 0, 0)),         # attention mask, row form
            pl.BlockSpec((1, TQ, 1), lambda b, q: (b, q, 0)),        # INF*mask, column form
            pl.BlockSpec((1, heads, L), lambda b, q: (b, 0, 0)),     # key-position bias
            pl.BlockSpec((1, heads, TQ), lambda b, q: (b, 0, q)),    # query-position bias
        ],
        out_specs=pl.BlockSpec((1, heads, TQ, L), lambda b, q: (b, 0, q, 0)),
        compiler_params=pltpu.CompilerParams(
            # No cross-tile scratch anymore -> both axes parallel (v7x megacore friendly).
            dimension_semantics=("parallel", "parallel"),
            vmem_limit_bytes=vmem_limit),
    )(rq, rk, am_row, am_col_inf, be, bo)
    return out


def reference_forward(x, attention_mask, params, *, heads, head_size, tril_mask=True):
    """Pure-JAX mirror of the PyTorch forward (interleaved slicing kept verbatim)."""
    W1, b1, W2, b2 = params["W1"], params["b1"], params["W2"], params["b2"]
    sin_full, cos_full = params["sin"], params["cos"]
    L = x.shape[1]
    h = x @ W1 + b1
    qw, kw = h[..., 0::2], h[..., 1::2]
    sin, cos = sin_full[:L], cos_full[:L]

    def rope(t):
        t1, t2 = t[..., 0::2], t[..., 1::2]
        out = jnp.stack([t1 * cos - t2 * sin, t1 * sin + t2 * cos], axis=-1)
        return out.reshape(t.shape[:-1] + (-1,))

    qw, kw = rope(qw), rope(kw)
    logits = jnp.einsum("bmd,bnd->bmn", qw, kw) / head_size ** 0.5
    bias = jnp.swapaxes(h @ W2 + b2, 1, 2) / 2
    logits = logits[:, None] + bias[:, 0::2, None] + bias[:, 1::2, :, None]
    am = attention_mask.astype(jnp.float32)
    attn_mask = 1.0 - am[:, None, None, :] * am[:, None, :, None]
    logits = logits - attn_mask * INF
    if tril_mask:
        tri = jnp.tril(jnp.ones((L, L), jnp.float32), k=-1)
        logits = logits - tri * INF
    return logits


if __name__ == "__main__":
    def make_case(key, B, L, H, heads, head_size, max_length):
        k1, k2, k3, k4, k5 = jax.random.split(key, 5)
        x = jax.random.normal(k1, (B, L, H), jnp.float32)
        W1 = 0.1 * jax.random.normal(k2, (H, 2 * head_size), jnp.float32)
        b1 = 0.1 * jax.random.normal(k3, (2 * head_size,), jnp.float32)
        W2 = 0.1 * jax.random.normal(k4, (2 * head_size, 2 * heads), jnp.float32)
        b2 = 0.1 * jax.random.normal(k5, (2 * heads,), jnp.float32)
        # RoPE tables (same construction as RotaryPositionEmbedding.__init__)
        inv_freq = 1.0 / (10000.0 ** (jnp.arange(0, head_size, 2, dtype=jnp.float32)
                                      / head_size))
        t = jnp.arange(max_length, dtype=jnp.float32)
        freqs = t[:, None] * inv_freq[None, :]
        params = dict(W1=W1, b1=b1, W2=W2, b2=b2, sin=jnp.sin(freqs), cos=jnp.cos(freqs))
        # attention mask with padded positions so the mask path is exercised
        lens = jnp.array([L, L - 3])[:B]
        attention_mask = (jnp.arange(L)[None, :] < lens[:, None]).astype(jnp.float32)
        return x, attention_mask, params

    # ---- case A: small shapes, f32 throughout, strict check against the reference ----------
    B, L, H, heads, head_size = 2, 16, 32, 4, 16
    x, am, params = make_case(jax.random.PRNGKey(0), B, L, H, heads, head_size, max_length=64)
    out = efficient_global_pointer(x, am, params, heads=heads, head_size=head_size,
                                   tril_mask=True,
                                   out_dtype=jnp.float32, compute_dtype=jnp.float32)
    out = jax.block_until_ready(out)
    ref = reference_forward(x, am, params, heads=heads, head_size=head_size, tril_mask=True)
    assert out.shape == (B, heads, L, L)
    if not jnp.allclose(out, ref, atol=1e-2, rtol=1e-3):
        raise AssertionError("f32 Pallas kernel output does not match JAX reference")

    # ---- case B: multi-tile path (L=256 -> TQ=128, 2 query tiles) with production bf16 -----
    B, L, H, heads, head_size = 2, 256, 32, 2, 16
    x, am, params = make_case(jax.random.PRNGKey(1), B, L, H, heads, head_size, max_length=256)
    out_bf = efficient_global_pointer(x, am, params, heads=heads, head_size=head_size,
                                      tril_mask=True, tq=128)       # bf16 out/compute defaults
    out_bf = jax.block_until_ready(out_bf)
    ref = reference_forward(x, am, params, heads=heads, head_size=head_size, tril_mask=True)
    assert out_bf.shape == (B, heads, L, L)
    # bf16 output rounds the -10000/-20000 mask offsets (~-9984/-19968); rtol covers that.
    if not jnp.allclose(out_bf.astype(jnp.float32), ref, atol=1e-1, rtol=2e-2):
        raise AssertionError("bf16 Pallas kernel output does not match JAX reference")

    print("KERNEL_OK")
</pallas_src>

<mosaic_0001>
module attributes {stable_mosaic.version = 11 : i64} {
  func.func @_egp_kernel(%arg0: i32, %arg1: i32, %arg2: memref<1x16x16xf32, #tpu.memory_space<vmem>>, %arg3: memref<1x16x16xf32, #tpu.memory_space<vmem>>, %arg4: memref<1x1x16xf32, #tpu.memory_space<vmem>>, %arg5: memref<1x16x1xf32, #tpu.memory_space<vmem>>, %arg6: memref<1x4x16xf32, #tpu.memory_space<vmem>>, %arg7: memref<1x4x16xf32, #tpu.memory_space<vmem>>, %arg8: memref<1x4x16x16xf32, #tpu.memory_space<vmem>>) attributes {dimension_semantics = [#tpu.dimension_semantics<parallel>, #tpu.dimension_semantics<parallel>], iteration_bounds = array<i64: 2, 1>, scalar_prefetch = 0 : i64, scratch_operands = 0 : i64, tpu.core_type = #tpu.core_type<tc>, window_params = [{transform_indices = @transform_0, window_bounds = array<i64: 1, 16, 16>}, {transform_indices = @transform_1, window_bounds = array<i64: 1, 16, 16>}, {transform_indices = @transform_2, window_bounds = array<i64: 1, 1, 16>}, {transform_indices = @transform_3, window_bounds = array<i64: 1, 16, 1>}, {transform_indices = @transform_4, window_bounds = array<i64: 1, 4, 16>}, {transform_indices = @transform_5, window_bounds = array<i64: 1, 4, 16>}, {transform_indices = @transform_6, window_bounds = array<i64: 1, 4, 16, 16>}]} {
    %c0 = arith.constant 0 : index
    %c0_0 = arith.constant 0 : index
    %c0_1 = arith.constant 0 : index
    %0 = vector.load %arg2[%c0, %c0_0, %c0_1] : memref<1x16x16xf32, #tpu.memory_space<vmem>>, vector<1x16x16xf32>
    %1 = vector.shape_cast %0 : vector<1x16x16xf32> to vector<16x16xf32>
    %c0_2 = arith.constant 0 : index
    %c0_3 = arith.constant 0 : index
    %c0_4 = arith.constant 0 : index
    %2 = vector.load %arg3[%c0_2, %c0_3, %c0_4] : memref<1x16x16xf32, #tpu.memory_space<vmem>>, vector<1x16x16xf32>
    %3 = vector.shape_cast %2 : vector<1x16x16xf32> to vector<16x16xf32>
    %cst = arith.constant dense<0.000000e+00> : vector<16x16xf32>
    %4 = tpu.matmul %1, %3, %cst {dimension_numbers = #tpu.dot_dimension_numbers<[1], [1], [0], [0], [0, 0, 1, 0], [], []>} : vector<16x16xf32>, vector<16x16xf32>, vector<16x16xf32> -> vector<16x16xf32>
    %c0_5 = arith.constant 0 : index
    %c0_6 = arith.constant 0 : index
    %c0_7 = arith.constant 0 : index
    %5 = vector.load %arg5[%c0_5, %c0_6, %c0_7] : memref<1x16x1xf32, #tpu.memory_space<vmem>>, vector<1x16x1xf32>
    %6 = vector.shape_cast %5 : vector<1x16x1xf32> to vector<16x1xf32>
    %c0_8 = arith.constant 0 : index
    %c0_9 = arith.constant 0 : index
    %c0_10 = arith.constant 0 : index
    %7 = vector.load %arg4[%c0_8, %c0_9, %c0_10] : memref<1x1x16xf32, #tpu.memory_space<vmem>>, vector<1x1x16xf32>
    %8 = vector.shape_cast %7 : vector<1x1x16xf32> to vector<1x16xf32>
    %9 = vector.broadcast %6 : vector<16x1xf32> to vector<16x16xf32>
    %10 = vector.broadcast %8 : vector<1x16xf32> to vector<16x16xf32>
    %11 = arith.mulf %9, %10 : vector<16x16xf32>
    %cst_11 = arith.constant 1.000000e+04 : f32
    %12 = vector.broadcast %cst_11 : f32 to vector<16x16xf32>
    %13 = arith.subf %11, %12 : vector<16x16xf32>
    %c16_i32 = arith.constant 16 : i32
    %14 = arith.muli %arg1, %c16_i32 : i32
    %15 = tpu.iota {dimensions = array<i32: 0>} : vector<16x16xi32>
    %16 = vector.broadcast %14 : i32 to vector<16x16xi32>
    %17 = arith.addi %16, %15 : vector<16x16xi32>
    %18 = tpu.iota {dimensions = array<i32: 1>} : vector<16x16xi32>
    %19 = arith.cmpi sgt, %17, %18 : vector<16x16xi32>
    %cst_12 = arith.constant 1.000000e+04 : f32
    %cst_13 = arith.constant 0.000000e+00 : f32
    %20 = vector.broadcast %cst_12 : f32 to vector<16x16xf32>
    %21 = vector.broadcast %cst_13 : f32 to vector<16x16xf32>
    %22 = arith.select %19, %20, %21 : vector<16x16xi1>, vector<16x16xf32>
    %23 = arith.subf %13, %22 : vector<16x16xf32>
    %24 = arith.addf %4, %23 : vector<16x16xf32>
    %c0_14 = arith.constant 0 : index
    %c0_15 = arith.constant 0 : index
    %c0_16 = arith.constant 0 : index
    %25 = vector.load %arg6[%c0_14, %c0_15, %c0_16] : memref<1x4x16xf32, #tpu.memory_space<vmem>>, vector<1x4x16xf32>
    %26 = vector.shape_cast %25 : vector<1x4x16xf32> to vector<4x16xf32>
    %c0_17 = arith.constant 0 : index
    %c0_18 = arith.constant 0 : index
    %c0_19 = arith.constant 0 : index
    %27 = vector.load %arg7[%c0_17, %c0_18, %c0_19] : memref<1x4x16xf32, #tpu.memory_space<vmem>>, vector<1x4x16xf32>
    %28 = vector.shape_cast %27 : vector<1x4x16xf32> to vector<4x16xf32>
    %29 = vector.shape_cast %24 : vector<16x16xf32> to vector<1x16x16xf32>
    %30 = vector.shape_cast %26 : vector<4x16xf32> to vector<4x1x16xf32>
    %31 = vector.broadcast %29 : vector<1x16x16xf32> to vector<4x16x16xf32>
    %32 = vector.broadcast %30 : vector<4x1x16xf32> to vector<4x16x16xf32>
    %33 = arith.addf %31, %32 : vector<4x16x16xf32>
    %34 = vector.shape_cast %28 : vector<4x16xf32> to vector<4x16x1xf32>
    %35 = vector.broadcast %34 : vector<4x16x1xf32> to vector<4x16x16xf32>
    %36 = arith.addf %33, %35 : vector<4x16x16xf32>
    %c0_20 = arith.constant 0 : index
    %c0_21 = arith.constant 0 : index
    %c0_22 = arith.constant 0 : index
    %c0_23 = arith.constant 0 : index
    %37 = vector.load %arg8[%c0_20, %c0_21, %c0_22, %c0_23] : memref<1x4x16x16xf32, #tpu.memory_space<vmem>>, vector<1x4x16x16xf32>
    %38 = vector.shape_cast %37 : vector<1x4x16x16xf32> to vector<4x16x16xf32>
    %39 = vector.shape_cast %36 : vector<4x16x16xf32> to vector<1x4x16x16xf32>
    tpu.vector_store %arg8[%c0_20, %c0_21, %c0_22, %c0_23], %39 {strides = array<i32>} : memref<1x4x16x16xf32, #tpu.memory_space<vmem>>, vector<1x4x16x16xf32>,
    return
  }
  func.func @transform_0(%arg0: i32, %arg1: i32) -> (i32, i32, i32) {
    %c0_i32 = arith.constant 0 : i32
    %c0_i32_0 = arith.constant 0 : i32
    return %arg0, %arg1, %c0_i32 : i32, i32, i32
  }
  func.func @transform_1(%arg0: i32, %arg1: i32) -> (i32, i32, i32) {
    %c0_i32 = arith.constant 0 : i32
    %c0_i32_0 = arith.constant 0 : i32
    %c0_i32_1 = arith.constant 0 : i32
    return %arg0, %c0_i32, %c0_i32_0 : i32, i32, i32
  }
  func.func @transform_2(%arg0: i32, %arg1: i32) -> (i32, i32, i32) {
    %c0_i32 = arith.constant 0 : i32
    %c0_i32_0 = arith.constant 0 : i32
    %c0_i32_1 = arith.constant 0 : i32
    return %arg0, %c0_i32, %c0_i32_0 : i32, i32, i32
  }
  func.func @transform_3(%arg0: i32, %arg1: i32) -> (i32, i32, i32) {
    %c0_i32 = arith.constant 0 : i32
    %c0_i32_0 = arith.constant 0 : i32
    return %arg0, %arg1, %c0_i32 : i32, i32, i32
  }
  func.func @transform_4(%arg0: i32, %arg1: i32) -> (i32, i32, i32) {
    %c0_i32 = arith.constant 0 : i32
    %c0_i32_0 = arith.constant 0 : i32
    %c0_i32_1 = arith.constant 0 : i32
    return %arg0, %c0_i32, %c0_i32_0 : i32, i32, i32
  }
  func.func @transform_5(%arg0: i32, %arg1: i32) -> (i32, i32, i32) {
    %c0_i32 = arith.constant 0 : i32
    %c0_i32_0 = arith.constant 0 : i32
    return %arg0, %c0_i32, %arg1 : i32, i32, i32
  }
  func.func @transform_6(%arg0: i32, %arg1: i32) -> (i32, i32, i32, i32) {
    %c0_i32 = arith.constant 0 : i32
    %c0_i32_0 = arith.constant 0 : i32
    %c0_i32_1 = arith.constant 0 : i32
    return %arg0, %c0_i32, %arg1, %c0_i32_0 : i32, i32, i32, i32
  }
}

</mosaic_0001>

<bundles_post_ra>
// kernel: tpu_custom_call.1
= control target key start
LH: loop header
LB: loop body
LE: loop exit
PB: predicated region body
PF: predicated region fallthrough
CT: control target
= control target key end

     0   :  { %s1465_s0 = inlined_call_operand.vmem [shape: f32[2,16,16], index: 0, kind: input, shape index: {}]   ;;  %s1466_s1 = inlined_call_operand.hbm [shape: f32[2,16,16], index: 1, kind: input, shape index: {}]   ;;  %s1467_s2 = inlined_call_operand.hbm [shape: f32[2,1,16], index: 2, kind: input, shape index: {}]   ;;  %s1468_s3 = inlined_call_operand.vmem [shape: f32[2,16,1], index: 3, kind: input, shape index: {}]   ;;  %s1469_s4 = inlined_call_operand.vmem [shape: f32[2,4,16], index: 4, kind: input, shape index: {}]   ;;  %s1470_s5 = inlined_call_operand.hbm [shape: f32[2,4,16], index: 5, kind: input, shape index: {}]   ;;  %s1471_s6 = inlined_call_operand.hbm [shape: f32[2,4,16,16], index: 6, kind: output, shape index: {}]  }
   0x1   :  { %1477 = sst [smem:[#allocation17_spill]] %s1466_s1 }
   0x2   :  { %1478 = sst [smem:[#allocation18_spill]] %s1467_s2 }
   0x3   :  { %11 = vsyncpa [#allocation3], 0 }
   0x4   :  { %13 = vsyncpa [#allocation3 + $0x1], 0 }
   0x5   :  { %14 = vsyncpa [#allocation6], 0 }
   0x6   :  { %16 = vsyncpa [#allocation6 + $0x1], 0 }
   0x7   :  { %17 = vsyncpa [#allocation4], 0 }
   0x8   :  { %19 = vsyncpa [#allocation4 + $0x1], 0  ;;  %s1222_s21 = smov 0   ;;  %s1224_s22 = smov 0  }
   0x9   :  { %s1226_s23 = smov 0   ;;  %s1228_s24 = smov 0  }
   0xa   :  { %s1230_s25 = smov 0   ;;  %s1232_s26 = smov 0  }
   0xb LB: > { %1479 = sst [smem:[#allocation12_spill]] %s1162_s23  ;;  %s1253_s27 = sadd.s32 4294967295, %s1174_s26   ;;  %s1174_s26 = sphi %s1232_s26, %s25_s26   ;;  %s1170_s25 = sphi %s1230_s25, %s1500_s25   ;;  %s1166_s24 = sphi %s1228_s24, %s1499_s24   ;;  %s1162_s23 = sphi %s1226_s23, %s1495_s23   ;;  %s1158_s22 = sphi %s1224_s22, %s1498_s22   ;;  %s1154_s21 = sphi %s1222_s21, %s1497_s21  }
   0xc   : > { %1480 = sst [smem:[#allocation13_spill]] %s1174_s26  ;;  %s880_s28 = sadd.s32 4294967294, %s1174_s26  }
   0xd   : > { %s37_s29 = sadd.s32 1, %s1170_s25  ;;  %s72_s30 = sadd.s32 1, %s1162_s23 }
   0xe   : > { %p39_p0 = scmp.ge.s32.totalorder %s37_s29, 2  ;;  %p79_p1 = scmp.ne.s32.totalorder %s1162_s23, %s1158_s22 }
   0xf   : > { %p80_p2 = scmp.eq.s32.totalorder %s1174_s26, 0  ;;  %p85_p3 = scmp.ne.s32.totalorder %s1158_s22, %s1154_s21 }
  0x10   : > { %s1502_s29 = smov (%p39_p0, %s37_s29), 0  ;;  %p86_p5 = scmp.eq.s32.totalorder %s1253_s27, 0 }
  0x11   : > { %1481 = sst [smem:[#allocation14_spill]] %s1502_s29  ;;  %p1265_p4 = por %p80_p2, %p79_p1 }
  0x12   : > { %s69_s8 = ssub.s32 %s1170_s25, %s1502_s29  ;;  %p219_p6 = scmp.eq.s32.totalorder %s1253_s27, 1 }
  0x13   : > { %p70_p7 = scmp.eq.s32.totalorder %s69_s8, 0  ;;  %p1273_p8 = por %p86_p5, %p85_p3 }
  0x14   : > { %p1277_p9 = por %p219_p6, %p79_p1  ;;  %p225_p10 = scmp.eq.s32.totalorder %s880_s28, 1 }
  0x15   : > { %s1282_s11 = scalar_select %p70_p7, %s1162_s23, %s72_s30  }
  0x16   : > { %p1284_p11 = por %p225_p10, %p85_p3  ;;  %p882_p12 = scmp.ge.s32.totalorder %s1174_s26, 2 }
  0x17   : > { %1485 = sst [smem:[#allocation15_spill]] %s1282_s11  ;;  %p948_p13 = scmp.lt.s32.totalorder %s1174_s26, 2 }
  0x18   : > { %s1486_s12 = scalar_select %p1284_p11, 1, 0 }
  0x19   : > { %s1291_s13 = sand.u32 1, %s1162_s23   ;;  %s279_s14 = sand.u32 1, %s1174_s26  }
  0x1a   : > { %1487 = sst [smem:[#allocation16_spill]] %s1486_s12  ;;  %p1296_p0 = pnand %p948_p13, %p1265_p4 }
  0x1b   : > { %s886_s16 = sshll.u32 %s1170_s25, 4  ;;  %s282_s17 = scalar_lea.vmem [#allocation5], %s1291_s13 }
  0x1c   : > { %s289_s18 = sshll.u32 %s282_s17, 4  ;;  %s1489_s2 = sld [smem:[#allocation18_spill]]  ;;  %s290_s18 = int_to_ptr.vmem [resolvable:$true] %s289_s18 }
  0x1d   : > { %p889_p1 = scmp.ge.s32.totalorder %s1174_s26, 1  ;;  %s1306_s30 = scalar_lea.sflag [#allocation6], %s279_s14 }
  0x1e   : > { %p1008_p2 = pneg %p1296_p0  ;;  %s1019_s7 = scalar_lea.vmem %s290_s18, 16 }
  0x1f   : > { %p1020_p3 = scmp.ne.s32.totalorder %s290_s18, %s1019_s7  ;;  %s1176_s8 = smov [#allocation5]  }
  0x20   : > { %s1024_s29 = sshll.u32 %s1176_s8, 4  ;;  %s1025_s29 = int_to_ptr.vmem [resolvable:$false] %s1024_s29 }
  0x21   : > { %p1022_p4 = pnand %p1020_p3, %p1008_p2  ;;  %s1026_s17 = scalar_lea.vmem %s1025_s29, 32 }
  0x22   : > { %s287_s28 = scalar_lea.hbm %s1489_s2, %s886_s16  ;;  %p1027_p6 = scmp.lt.s32.totalorder %s290_s18, %s1025_s29 }
  0x23   : > { %p1023_p5 = pneg %p1022_p4  ;;  %p1028_p7 = scmp.lt.s32.totalorder %s1026_s17, %s1019_s7 }
  0x25   : > { %p1029_p10 = por %p1028_p7, %p1027_p6 }
  0x27   : > { %p1030_p13 = pnand %p1029_p10, %p1023_p5 }
  0x29   : > { %1033 = shalt.err (!%p1030_p13)
}
  0x2a   : > { %940 = dma.hbm_to_vmem [thread:$0]  (!%p1296_p0), %s287_s28, 16, %s290_s18, %s1306_s30  }
  0x2b   : > { %p333_p3 = scmp.lt.s32.totalorder %s1174_s26, 3  ;;  %s883_s29 = sshll.u32 %s1291_s13, 4 }
  0x2c   : > { %s911_s16 = sshll.u32 %s1170_s25, 8  ;;  %s1491_s1 = sld [smem:[#allocation17_spill]] }
  0x2d   : > { %p1319_p4 = pnand %p889_p1, %p333_p3  ;;  %s262_s8 = scalar_lea.vmem [#allocation2], %s883_s29 }
  0x2e   : > { %s269_s17 = sshll.u32 %s262_s8, 4  ;;  %s887_s2 = sshll.u32 %s1291_s13, 2  ;;  %s270_s17 = int_to_ptr.vmem [resolvable:$true] %s269_s17 }
  0x2f   : > { %s259_s11 = scalar_lea.sflag [#allocation3], %s1291_s13  ;;  %s1047_s23 = scalar_lea.vmem %s270_s17, 256 }
  0x30   : > { %p1048_p5 = scmp.ne.s32.totalorder %s270_s17, %s1047_s23  ;;  %s1177_s18 = smov [#allocation2]  }
  0x31   : > { %s1052_s28 = sshll.u32 %s1177_s18, 4  ;;  %s1053_s28 = int_to_ptr.vmem [resolvable:$false] %s1052_s28 }
  0x32   : > { %s268_s7 = scalar_lea.hbm %s1491_s1, %s911_s16  ;;  %p1050_p6 = pnand %p1048_p5, %p1008_p2 }
  0x33   : > { %s1054_s26 = scalar_lea.vmem %s1053_s28, 512  ;;  %p1055_p7 = scmp.lt.s32.totalorder %s270_s17, %s1053_s28 }
  0x34   : > { %p1051_p1 = pneg %p1050_p6  ;;  %p1056_p10 = scmp.lt.s32.totalorder %s1054_s26, %s1047_s23 }
  0x36   : > { %p1057_p13 = por %p1056_p10, %p1055_p7 }
  0x38   : > { %p1058_p3 = pnand %p1057_p13, %p1051_p1 }
  0x3a   : > { %1061 = shalt.err (!%p1058_p3)
}
  0x3b   : > { %s1178_s29 = smov 128   ;;  %s1179_s13 = smov 8  }
  0x3c   : > { %937 = dma.hbm_to_vmem [thread:$0]  (!%p1296_p0), %s268_s7, 256, %s270_s17, %s259_s11, %s1178_s29, %s1178_s29, %s1179_s13  }
  0x3d   : > { %s888_s16 = sshll.u32 %s1170_s25, 6  ;;  %s320_s18 = scalar_lea.vmem [#allocation7], %s887_s2 }
  0x3e   : > { %s326_s8 = scalar_lea.hbm %s1470_s5, %s888_s16  ;;  %s328_s1 = sshll.u32 %s320_s18, 4  ;;  %s329_s1 = int_to_ptr.vmem [resolvable:$true] %s328_s1 }
  0x3f   : > { %s1075_s28 = scalar_lea.vmem %s329_s1, 64  ;;  %s1180_s23 = smov [#allocation7]  }
  0x40   : > { %p1076_p5 = scmp.ne.s32.totalorder %s329_s1, %s1075_s28  ;;  %s1080_s26 = sshll.u32 %s1180_s23, 4  ;;  %s1081_s26 = int_to_ptr.vmem [resolvable:$false] %s1080_s26 }
  0x41   : > { %s1082_s12 = scalar_lea.vmem %s1081_s26, 128  ;;  %p1083_p7 = scmp.lt.s32.totalorder %s329_s1, %s1081_s26 }
  0x42   : > { %p1078_p6 = pnand %p1076_p5, %p1008_p2  ;;  %p1084_p10 = scmp.lt.s32.totalorder %s1082_s12, %s1075_s28 }
  0x44   : > { %p1079_p1 = pneg %p1078_p6  ;;  %p1085_p13 = por %p1084_p10, %p1083_p7 }
  0x46   : > { %p1086_p3 = pnand %p1085_p13, %p1079_p1 }
  0x48   : > { %1089 = shalt.err (!%p1086_p3)
}
  0x49   : > { %943 = dma.hbm_to_vmem [thread:$0]  (!%p1296_p0), %s326_s8, 64, %s329_s1, %s1306_s30  }
  0x4a   : > { %337 = sbr.rel (%p1319_p4) target bundleno = 309 (0x135), region = 44  ;;  %s1348_s2 = sand.u32 (!%p1319_p4), 1, %s1158_s22  }
  0x4b   : > { %s890_s11 = sshll.u32 (!%p1319_p4), %s1348_s2, 4  ;;  %s340_s7 = scalar_lea.sflag (!%p1319_p4), [#allocation3], %s1348_s2 }
  0x4c   : > { %s343_s17 = scalar_lea.vmem (!%p1319_p4), [#allocation2], %s890_s11 }
  0x4f   : > { %1141 = dma.done.wait (%p1273_p8), %s340_s7, 256  }
  0x50   : > { %1143 = vsyncadd (%p1273_p8), %s340_s7, 4294967040  ;;  %s348_s1 = sand.u32 1, %s1253_s27   ;;  %s351_s15 = scalar_lea.vmem [#allocation5], %s1348_s2 }
  0x51   : > { %s349_s12 = scalar_lea.sflag [#allocation6], %s348_s1 }
  0x52   : > { %1145 = dma.done.wait (%p1273_p8), %s349_s12, 80  }
  0x53   : > { %1147 = vsyncadd (%p1273_p8), %s349_s12, 4294967216  ;;  %p421_p0 = scmp.lt.s32.totalorder %s1166_s24, 1  ;;  %v473_v0 = vlaneseq  ;;  %v1181_v1 = vmov 0   ;;  %s891_s27 = sshll.u32 %s1348_s2, 2  ;;  %vm487_vm0 = vcmask 130048   ;;  %v448_v4 = vld [vmem:[%s343_s17 + $0x8] sm:$0xff] }
  0x54   : > { %1005 = vset.pattern.permute.xlu0 %v1181_v1  ;;  %v447_v5 = vld [vmem:[%s343_s17] sm:$0xff]  ;;  %919 = vmatprep.subr.msk.mxu0 %vm487_vm0, %v448_v4  ;;  %s360_s8 = scalar_lea.vmem [#allocation7], %s891_s27  ;;  %v1182_v18 = vmov 1966171168   ;;  %v1183_v39 = vmov 0.0   ;;  %s892_s11 = sshll.u32 %s1348_s2, 6 }
  0x55   : > { %s1364_s30 = scalar_select %p421_p0, %s1166_s24, 1  ;;  %v1366_v2 = vshrl.u32 %v473_v0, 7  ;;  %920 = vmatpush3.xpose.msk.msra.mxu0 %vm487_vm0, %v448_v4  ;;  %v576_v8 = vld [vmem:[%s360_s8] sm:$0xf]  ;;  %v587_v19 = vunpack.c.l.s4 %v1182_v18  ;;  %v898_v27 = vld [vmem:[%s351_s15] ss:$0 sm:$0xff] }
  0x56   : > { %921 = vmatprep.subr.msk.mxu0 %vm487_vm0, %v447_v5  ;;  %v480_v30 = vand.u32 127, %v473_v0  ;;  %s914_s7 = sshll.u32 %s1166_s24, 10  ;;  %s419_s17 = scalar_lea.vmem [#allocation8], %s892_s11 }
  0x57   : > { %s912_s14 = sshll.u32 %s1364_s30, 4  ;;  %v1377_v3 = vsub.s32 0, %v1366_v2  ;;  %v643_v11 = vsub.s32 1, %v1366_v2  ;;  %v654_v14 = vsub.s32 2, %v1366_v2  ;;  %v665_v16 = vsub.s32 3, %v1366_v2  ;;  %s897_s18 = sshll.u32 %s1364_s30, 2 }
  0x58   : > { %s428_s9 = scalar_lea.vmem %s1465_s0, %s912_s14  ;;  %s438_s20 = scalar_lea.vmem %s1468_s3, %s912_s14  ;;  %v588_v22 = vunpack.c.0.s8 %v587_v19  ;;  %v475_v29 = vadd.s32 8, %v1366_v2  ;;  %vm481_vm2 = vcmp.gt.s32.totalorder %v1366_v2, %v480_v30 }
  0x59   : > { %v445_v6 = vld [vmem:[%s428_s9] sm:$0xff]  ;;  %v450_v9 = vld [vmem:[%s438_s20 + $0x8] sm:$0xff]  ;;  %v633_v10 = vrot.slane %v576_v8, %v1377_v3  ;;  %922 = vmatpush3.xpose.msk.msra.mxu0 %vm487_vm0, %v447_v5  ;;  %v644_v13 = vrot.slane %v576_v8, %v643_v11  ;;  %v655_v15 = vrot.slane %v576_v8, %v654_v14  ;;  %v666_v17 = vrot.slane %v576_v8, %v665_v16  ;;  %s443_s26 = scalar_lea.vmem %s1469_s4, %s897_s18  ;;  %s706_s1 = sshll.u32 %s419_s17, 4  ;;  %s1412_s1 = int_to_ptr.vmem [resolvable:$true] %s706_s1 }
  0x5a   : > { %923 = vmatprep.mubr.msk.f32.mxu0 %vm487_vm0, %v445_v6  ;;  %v449_v7 = vld [vmem:[%s438_s20] sm:$0xff]  ;;  %v446_v12 = vld [vmem:[%s428_s9 + $0x8] sm:$0xff]  ;;  %v591_v25 = vsub.s32 %v588_v22, %v1366_v2  ;;  %vm482_vm1 = vcmp.gt.s32.totalorder %v475_v29, %v480_v30  ;;  %v483_v44 = vsel %vm481_vm2, 10000.0, %v1183_v39  ;;  %s1410_s15 = scalar_lea.hbm %s1471_s6, %s914_s7  ;;  %s691_s30 = scalar_lea.sflag [#allocation4], %s1348_s2 }
  0x5b   : > { %454 = vperm.xlu0 %1005, %v449_v7   ;;  %635 = vbcast.lane.b32.xlu1 %v633_v10, 256  ;;  %v905_v23 = vld.sshfl [vmem:[%s443_s26] sm:$0x33 pattern:$0x75316420]  ;;  %v484_v40 = vsel %vm482_vm1, 10000.0, %v1183_v39 }
  0x5c   : > { %924 = vmatmul.mubr.msk.f32.vlgmr.msra.gmra.mxu0 %vm487_vm0, %v446_v12  ;;  %v585_v26 = vcombine.high %v905_v23, %v905_v23  ;;  %v592_v31 = vrot.slane %v905_v23, %v591_v25  ;;  %s1090_s27 = scalar_lea.vmem %s1412_s1, 1024  ;;  %s1184_s14 = smov [#allocation8]  }
  0x5d   : > { %p1091_p8 = scmp.ne.s32.totalorder %s1412_s1, %s1090_s27  ;;  %s1094_s29 = sshll.u32 %s1184_s14, 4  ;;  %s1095_s29 = int_to_ptr.vmem [resolvable:$false] %s1094_s29 }
  0x5e   : > { %v599_v34 = vrot.slane %v585_v26, %v591_v25  ;;  %v600_v37 = vcombine.high %v592_v31, %v592_v31  ;;  %v605_v46 = vrot.slane %v592_v31, %v1377_v3  ;;  %s1096_s13 = scalar_lea.vmem %s1095_s29, 2048  ;;  %p1097_p5 = scmp.lt.s32.totalorder %s1412_s1, %s1095_s29 }
  0x5f   : > { %459 = vperm.xlu0 %1005, %v450_v9   ;;  %639 = vbcast.lane.b32.xlu1 %v633_v10, 264  ;;  %p1092_p2 = pnand %p1091_p8, %p1277_p9  ;;  %p1098_p6 = scmp.lt.s32.totalorder %s1096_s13, %s1090_s27 }
  0x60   : > { %v601_v41 = vcombine.high %v599_v34, %v599_v34  ;;  %v609_v47 = vrot.slane %v599_v34, %v1377_v3  ;;  %v613_v48 = vrot.slane %v600_v37, %v1377_v3 }
  0x61   : > { %p1093_p4 = pneg %p1092_p2  ;;  %p1099_p1 = por %p1098_p6, %p1097_p5 }
  0x62   : > { %v617_v51 = vrot.slane %v601_v41, %v1377_v3 }
  0x63   : > { %646 = vbcast.lane.b32.xlu0 %v644_v13, 256  ;;  %650 = vbcast.lane.b32.xlu1 %v644_v13, 264  ;;  %p1100_p7 = pnand %p1099_p1, %p1093_p4 }
  0x67   : > { %657 = vbcast.lane.b32.xlu0 %v655_v15, 256  ;;  %661 = vbcast.lane.b32.xlu1 %v655_v15, 264 }
  0x6b   : > { %668 = vbcast.lane.b32.xlu0 %v666_v17, 256  ;;  %672 = vbcast.lane.b32.xlu1 %v666_v17, 264 }
  0xcd   : > { %v636_v20 = vpop.permute.xlu1 %635 }
  0xd1   : > { %v640_v24 = vpop.permute.xlu1 %639 }
  0xd5   : > { %v651_v33 = vpop.permute.xlu1 %650 }
  0xd6   : > { %v455_v21 = vpop.permute.xlu0 %454 }
  0xd7   : > { %v468_v35 = vmul.f32 %v898_v27, %v455_v21 }
  0xd9   : > { %v899_v42 = vadd.f32 -10000.0, %v468_v35  ;;  %v662_v43 = vpop.permute.xlu1 %661 }
  0xda   : > { %v460_v28 = vpop.permute.xlu0 %459 }
  0xdb   : > { %v469_v32 = vmul.f32 %v898_v27, %v460_v28  ;;  %v485_v53 = vsub.f32 %v899_v42, %v483_v44 }
  0xdd   : > { %v900_v38 = vadd.f32 -10000.0, %v469_v32  ;;  %v673_v59 = vpop.permute.xlu1 %672 }
  0xde   : > { %v647_v36 = vpop.permute.xlu0 %646 }
  0xdf   : > { %v486_v45 = vsub.f32 %v900_v38, %v484_v40 }
  0xe2   : > { %v658_v49 = vpop.permute.xlu0 %657 }
  0xe6   : > { %v669_v1 = vpop.permute.xlu0 %668 }
 0x11c   : > { %v925_v50 = vpop.f32.mrf.mxu0 }
 0x11d   : > { %v572_v52 = vadd.f32 %v925_v50, %v486_v45 }
 0x11e   : > { %v566_v54 = vpop.f32.mrf.mxu0 }
 0x11f   : > { %v623_v55 = vadd.f32 %v605_v46, %v572_v52  ;;  %v625_v56 = vadd.f32 %v609_v47, %v572_v52  ;;  %v627_v57 = vadd.f32 %v613_v48, %v572_v52  ;;  %v567_v58 = vadd.f32 %v566_v54, %v485_v53 }
 0x120   : > { %v629_v60 = vadd.f32 %v617_v51, %v572_v52 }
 0x121   : > { %v675_v61 = vadd.f32 %v640_v24, %v623_v55  ;;  %v677_v62 = vadd.f32 %v651_v33, %v625_v56  ;;  %v679_v63 = vadd.f32 %v662_v43, %v627_v57  ;;  %v622_v0 = vadd.f32 %v605_v46, %v567_v58 }
 0x122   : > { %v624_v2 = vadd.f32 %v609_v47, %v567_v58  ;;  %v626_v4 = vadd.f32 %v613_v48, %v567_v58  ;;  %v681_v3 = vadd.f32 %v673_v59, %v629_v60  ;;  %v628_v5 = vadd.f32 %v617_v51, %v567_v58 }
 0x123   : > { %683 = vst.msk [vmem:[%s419_s17 + $0x8] sm:$0xff] %vm487_vm0, %v675_v61  ;;  %685 = vst.msk [vmem:[%s419_s17 + $0x18] sm:$0xff] %vm487_vm0, %v677_v62  ;;  %v674_v6 = vadd.f32 %v636_v20, %v622_v0 }
 0x124   : > { %687 = vst.msk [vmem:[%s419_s17 + $0x28] sm:$0xff] %vm487_vm0, %v679_v63  ;;  %v676_v7 = vadd.f32 %v647_v36, %v624_v2  ;;  %v678_v8 = vadd.f32 %v658_v49, %v626_v4  ;;  %689 = vst.msk [vmem:[%s419_s17 + $0x38] sm:$0xff] %vm487_vm0, %v681_v3  ;;  %v680_v9 = vadd.f32 %v669_v1, %v628_v5 }
 0x125   : > { %682 = vst.msk [vmem:[%s419_s17] sm:$0xff] %vm487_vm0, %v674_v6 }
 0x126   : > { %684 = vst.msk [vmem:[%s419_s17 + $0x10] sm:$0xff] %vm487_vm0, %v676_v7  ;;  %686 = vst.msk [vmem:[%s419_s17 + $0x20] sm:$0xff] %vm487_vm0, %v678_v8 }
 0x127   : > { %688 = vst.msk [vmem:[%s419_s17 + $0x30] sm:$0xff] %vm487_vm0, %v680_v9 }
 0x128   : > { %1103 = shalt.err (!%p1100_p7)
}
 0x129   : > { %s1104_s9 = scalar_lea.hbm %s1410_s15, 1024  ;;  %s1108_s20 = scalar_lea.hbm %s1471_s6, 2048 }
 0x12a   : > { %p1105_p10 = scmp.ne.s32.totalorder %s1410_s15, %s1104_s9  ;;  %p1109_p0 = scmp.lt.s32.totalorder %s1410_s15, %s1471_s6 }
 0x12b   : > { %p1110_p8 = scmp.lt.s32.totalorder %s1108_s20, %s1104_s9 }
 0x12c   : > { %p1106_p13 = pnand %p1105_p10, %p1277_p9 }
 0x12d   : > { %p1111_p2 = por %p1110_p8, %p1109_p0 }
 0x12e   : > { %p1107_p3 = pneg %p1106_p13 }
 0x130   : > { %p1112_p4 = pnand %p1111_p2, %p1107_p3 }
 0x132   : > { %1115 = shalt.err (!%p1112_p4)
}
 0x133   : > { %s1185_s28 = smov 128   ;;  %s1186_s23 = smov 8  }
 0x134   : > { %932 = dma.vmem_to_hbm [thread:$0]  (%p1277_p9), %s1412_s1, 1024, %s1410_s15, %s691_s30, %s1185_s28, %s1185_s28, %s1186_s23  }
 0x135 PF: > { %s1493_s11 = sld [smem:[#allocation13_spill]]  ;;  %s721_s7 = sand.u32 1, %s1154_s21  }
 0x136   : > { %p945_p5 = pnand %p882_p12, %p1284_p11  ;;  %s722_s17 = scalar_lea.sflag [#allocation4], %s721_s7 }
 0x138   : > { %p946_p6 = pneg %p945_p5 }
 0x13a   : > { %1149 = dma.done.wait (%p946_p6), %s722_s17, 1024  }
 0x13b   : > { %1151 = vsyncadd (%p946_p6), %s722_s17, 4294966272  ;;  %s25_s26 = sadd.s32 1, %s1493_s11   ;;  %s1494_s24 = sld [smem:[#allocation12_spill]] }
 0x13c   : > { %p22_p1 = scmp.ge.s32.totalorder %s25_s26, 4   ;;  %s1495_s23 = sld [smem:[#allocation15_spill]] }
 0x13d   : > { %s1496_s10 = sld [smem:[#allocation14_spill]]  ;;  %s1497_s21 = smov %s1158_s22 }
 0x13f   :  { %24 = sbr.rel (!%p22_p1) target bundleno = 11 (0xb), region = 122 }
 0x141   : > { %s1498_s22 = smov %s1494_s24  ;;  %s1499_s24 = smov %s1170_s25 }
 0x143   : > { %s1500_s25 = smov %s1496_s10 }
 0x144   :  { %727 = vsyncpa [#allocation3], 1 }
 0x145   :  { %729 = vsyncpa [#allocation3 + $0x1], 1 }
 0x146   :  { %730 = vsyncpa [#allocation6], 1 }
 0x147   :  { %732 = vsyncpa [#allocation6 + $0x1], 1 }
 0x148   :  { %733 = vsyncpa [#allocation4], 1 }
 0x149   :  { %735 = vsyncpa [#allocation4 + $0x1], 1 }

</bundles_post_ra>
